<compile_context>
chip_gen: v7x
topology: tpu7x:2x2x1
jax: 0.10.0
libtpu: 0.0.40
codegen_flags: <defaults>
</compile_context>

<pallas_src>
import jax
import jax.numpy as jnp
from jax.experimental import pallas as pl
from jax.experimental.pallas import tpu as pltpu


def _round_up(x, m):
    return (x + m - 1) // m * m


def _vmem_capacity_bytes():
    try:
        return int(pltpu.get_tpu_info().vmem_capacity_bytes)
    except Exception:
        return 64 * 1024 * 1024  # conservative fallback (v7x per-core VMEM)


def head_kernel(x_ref, w1_ref, b1_ref, w2_ref, b2_ref, o_ref):
    """One batch tile: spatial pool, then fc1 -> relu -> fc3.

    x_ref : (TN, C, S)  spatial on lanes, channels on sublanes (native NCHW)
    w1_ref: (C, HP)     pre-scaled by 1/S (mean folded into the weight)
    b1_ref: (1, HP)
    w2_ref: (HP, KP)
    b2_ref: (1, KP)
    o_ref : (TN, KP)    lane-dense padded output (sliced back in the wrapper)
    """
    x = x_ref[...].astype(jnp.float32)          # accumulate in f32
    pooled = jnp.sum(x, axis=-1)                # (TN, C): XLU lane-reduce, ~free
    h = jnp.dot(pooled, w1_ref[...], preferred_element_type=jnp.float32)
    h = jnp.maximum(h + b1_ref[...], 0.0)       # F.relu(fc1(x))
    y = jnp.dot(h, w2_ref[...], preferred_element_type=jnp.float32) + b2_ref[...]
    o_ref[...] = y.astype(o_ref.dtype)


def prepare_head_params(w1, b1, w2, b2, spatial_size, param_dtype=jnp.float32):
    """Pad fc1/fc3 params lane-dense and fold the 1/(H*W) mean scale into w1.

    Call ONCE at model init (hoisted out of the per-forward path).
    Layout is (in, out), i.e. transposed vs. PyTorch's (out, in).
      w1: (C, hid)   b1: (hid,)   w2: (hid, K)   b2: (K,)
    """
    C, hid = w1.shape
    K = w2.shape[1]
    HP = _round_up(hid, 128)          # 1000 -> 1024: lane-dense hidden activation
    KP = _round_up(max(K, 1), 128)    # e.g. 10 -> 128: unmasked lane-dense stores
    scale = 1.0 / float(spatial_size)

    w1p = jnp.zeros((C, HP), param_dtype).at[:, :hid].set(
        (w1.astype(jnp.float32) * scale).astype(param_dtype))
    b1p = jnp.zeros((1, HP), jnp.float32).at[0, :hid].set(b1.astype(jnp.float32))
    w2p = jnp.zeros((HP, KP), param_dtype).at[:hid, :K].set(w2.astype(param_dtype))
    b2p = jnp.zeros((1, KP), jnp.float32).at[0, :K].set(b2.astype(jnp.float32))
    return (w1p, b1p, w2p, b2p), K


def conv_classifier_head(x, params, n_classes):
    """x: (N, C, H, W); params from prepare_head_params(). Returns (N, n_classes).

    (torch's `.squeeze()` only changes the shape when N == 1; for N > 1 the
    output is (N, n_classes), reproduced here.)
    """
    w1p, b1p, w2p, b2p = params
    N, C, H, W = x.shape
    S = H * W
    HP = w1p.shape[1]
    KP = w2p.shape[1]

    # Layout-preserving collapse of the two minor dims: no HBM pass over x.
    x3 = x.reshape(N, C, S)
    itemsize = jnp.dtype(x.dtype).itemsize
    per_row = C * S * itemsize                      # bytes of one example

    # ---- batch-tile selection against this chip's VMEM ---------------------
    vmem_cap = _vmem_capacity_bytes()
    param_bytes = sum(int(a.size) * jnp.dtype(a.dtype).itemsize
                      for a in (w1p, b1p, w2p, b2p))
    x_budget = max(4 << 20, int(vmem_cap * 0.7) - 2 * param_bytes)
    max_rows = max(1, x_budget // (2 * per_row))    # 2 = double-buffered x tile

    if N <= 8:
        tn = N                                      # full-extent batch block
    else:
        tn = min(64,                                # big blocks -> near roofline
                 max(8, (max_rows // 8) * 8),       # fit double-buffered in VMEM
                 _round_up((N + 1) // 2, 8))        # >= 2 tiles for v7x megacore
    grid = (pl.cdiv(N, tn),)                        # partial last tile is OK

    x_block_bytes = tn * per_row
    required = 2 * x_block_bytes + 2 * param_bytes + 2 * tn * KP * 4 + (2 << 20)
    vmem_limit = max(32 << 20, min(required + (8 << 20), int(vmem_cap * 0.9)))

    cost = pl.CostEstimate(
        flops=N * C * S + 2 * N * (C * HP + HP * KP),
        transcendentals=0,
        bytes_accessed=N * C * S * itemsize + param_bytes + N * KP * 4,
    )

    out_padded = pl.pallas_call(
        head_kernel,
        out_shape=jax.ShapeDtypeStruct((N, KP), jnp.float32),
        grid_spec=pltpu.PrefetchScalarGridSpec(
            num_scalar_prefetch=0,
            grid=grid,
            in_specs=[
                # x tile: the only array streamed per grid step (pipelined DMA).
                pl.BlockSpec((tn, C, S), lambda i: (i, 0, 0)),
                # Constant index maps: params DMA'd once, resident across grid.
                pl.BlockSpec((C, HP), lambda i: (0, 0)),
                pl.BlockSpec((1, HP), lambda i: (0, 0)),
                pl.BlockSpec((HP, KP), lambda i: (0, 0)),
                pl.BlockSpec((1, KP), lambda i: (0, 0)),
            ],
            out_specs=pl.BlockSpec((tn, KP), lambda i: (i, 0)),
        ),
        compiler_params=pltpu.CompilerParams(
            dimension_semantics=("parallel",),
            vmem_limit_bytes=int(vmem_limit),
        ),
        cost_estimate=cost,
    )(x3, w1p, b1p, w2p, b2p)

    return out_padded[:, :n_classes]


if __name__ == "__main__":
    # Small shapes consistent with the module: batch=2, in_features(channels)=4,
    # spatial 16x16, hidden fixed at 1000 by the module, n_classes=10.
    N, C, H, W = 2, 4, 16, 16
    HID, K = 1000, 10

    key = jax.random.PRNGKey(0)
    kx, kw1, kb1, kw2, kb2 = jax.random.split(key, 5)

    x = jax.random.normal(kx, (N, C, H, W), dtype=jnp.float32)
    # Parameters in (in, out) layout (transposed vs. PyTorch's (out, in)).
    w1 = jax.random.normal(kw1, (C, HID), dtype=jnp.float32) * 0.05
    b1 = jax.random.normal(kb1, (HID,), dtype=jnp.float32) * 0.01
    w2 = jax.random.normal(kw2, (HID, K), dtype=jnp.float32) * 0.05
    b2 = jax.random.normal(kb2, (K,), dtype=jnp.float32) * 0.01

    # One-time (init-time) parameter preparation -- hoisted out of the forward.
    params, n_classes = prepare_head_params(w1, b1, w2, b2, spatial_size=H * W)

    out = conv_classifier_head(x, params, n_classes)
    out = jax.block_until_ready(out)

    # Pure-JAX reference of the PyTorch forward.
    pooled_ref = jnp.mean(x, axis=(2, 3))
    ref = jnp.maximum(pooled_ref @ w1 + b1, 0.0) @ w2 + b2
    assert out.shape == (N, K)
    assert jnp.allclose(out, ref, atol=1e-4, rtol=1e-4), float(
        jnp.max(jnp.abs(out - ref)))

    print("KERNEL_OK")
</pallas_src>

<mosaic_0001>
module attributes {stable_mosaic.version = 11 : i64} {
  func.func @head_kernel(%arg0: i32, %arg1: memref<2x4x256xf32, #tpu.memory_space<vmem>>, %arg2: memref<4x1024xf32, #tpu.memory_space<vmem>>, %arg3: memref<1x1024xf32, #tpu.memory_space<vmem>>, %arg4: memref<1024x128xf32, #tpu.memory_space<vmem>>, %arg5: memref<1x128xf32, #tpu.memory_space<vmem>>, %arg6: memref<2x128xf32, #tpu.memory_space<vmem>>) attributes {dimension_semantics = [#tpu.dimension_semantics<parallel>], iteration_bounds = array<i64: 1>, scalar_prefetch = 0 : i64, scratch_operands = 0 : i64, tpu.core_type = #tpu.core_type<tc>, window_params = [{transform_indices = @transform_0, window_bounds = array<i64: 2, 4, 256>}, {pipeline_mode = #tpu.pipeline_mode<synchronous>, transform_indices = @transform_1, window_bounds = array<i64: 4, 1024>}, {pipeline_mode = #tpu.pipeline_mode<synchronous>, transform_indices = @transform_2, window_bounds = array<i64: 1, 1024>}, {pipeline_mode = #tpu.pipeline_mode<synchronous>, transform_indices = @transform_3, window_bounds = array<i64: 1024, 128>}, {pipeline_mode = #tpu.pipeline_mode<synchronous>, transform_indices = @transform_4, window_bounds = array<i64: 1, 128>}, {transform_indices = @transform_5, window_bounds = array<i64: 2, 128>}]} {
    %c0 = arith.constant 0 : index
    %c0_0 = arith.constant 0 : index
    %c0_1 = arith.constant 0 : index
    %0 = vector.load %arg1[%c0, %c0_0, %c0_1] : memref<2x4x256xf32, #tpu.memory_space<vmem>>, vector<2x4x256xf32>
    %cst = arith.constant dense<0.000000e+00> : vector<2x4xf32>
    %1 = vector.multi_reduction <add>, %0, %cst [2] : vector<2x4x256xf32> to vector<2x4xf32>
    %c0_2 = arith.constant 0 : index
    %c0_3 = arith.constant 0 : index
    %2 = vector.load %arg2[%c0_2, %c0_3] : memref<4x1024xf32, #tpu.memory_space<vmem>>, vector<4x1024xf32>
    %cst_4 = arith.constant dense<0.000000e+00> : vector<2x1024xf32>
    %3 = tpu.matmul %1, %2, %cst_4 {dimension_numbers = #tpu.dot_dimension_numbers<[1], [0], [0], [1], [0, 0, 1, 1], [], []>} : vector<2x4xf32>, vector<4x1024xf32>, vector<2x1024xf32> -> vector<2x1024xf32>
    %c0_5 = arith.constant 0 : index
    %c0_6 = arith.constant 0 : index
    %4 = vector.load %arg3[%c0_5, %c0_6] : memref<1x1024xf32, #tpu.memory_space<vmem>>, vector<1x1024xf32>
    %5 = vector.broadcast %4 : vector<1x1024xf32> to vector<2x1024xf32>
    %6 = arith.addf %3, %5 : vector<2x1024xf32>
    %cst_7 = arith.constant 0.000000e+00 : f32
    %7 = vector.broadcast %cst_7 : f32 to vector<2x1024xf32>
    %8 = arith.maximumf %6, %7 : vector<2x1024xf32>
    %c0_8 = arith.constant 0 : index
    %c0_9 = arith.constant 0 : index
    %9 = vector.load %arg4[%c0_8, %c0_9] : memref<1024x128xf32, #tpu.memory_space<vmem>>, vector<1024x128xf32>
    %cst_10 = arith.constant dense<0.000000e+00> : vector<2x128xf32>
    %10 = tpu.matmul %8, %9, %cst_10 {dimension_numbers = #tpu.dot_dimension_numbers<[1], [0], [0], [1], [0, 0, 1, 1], [], []>} : vector<2x1024xf32>, vector<1024x128xf32>, vector<2x128xf32> -> vector<2x128xf32>
    %c0_11 = arith.constant 0 : index
    %c0_12 = arith.constant 0 : index
    %11 = vector.load %arg5[%c0_11, %c0_12] : memref<1x128xf32, #tpu.memory_space<vmem>>, vector<1x128xf32>
    %12 = vector.broadcast %11 : vector<1x128xf32> to vector<2x128xf32>
    %13 = arith.addf %10, %12 : vector<2x128xf32>
    %c0_13 = arith.constant 0 : index
    %c0_14 = arith.constant 0 : index
    %14 = vector.load %arg6[%c0_13, %c0_14] : memref<2x128xf32, #tpu.memory_space<vmem>>, vector<2x128xf32>
    tpu.vector_store %arg6[%c0_13, %c0_14], %13 {strides = array<i32>} : memref<2x128xf32, #tpu.memory_space<vmem>>, vector<2x128xf32>,
    return
  }
  func.func @transform_0(%arg0: i32) -> (i32, i32, i32) {
    %c0_i32 = arith.constant 0 : i32
    %c0_i32_0 = arith.constant 0 : i32
    %c0_i32_1 = arith.constant 0 : i32
    return %arg0, %c0_i32, %c0_i32_0 : i32, i32, i32
  }
  func.func @transform_1(%arg0: i32) -> (i32, i32) {
    %c0_i32 = arith.constant 0 : i32
    %c0_i32_0 = arith.constant 0 : i32
    %c0_i32_1 = arith.constant 0 : i32
    return %c0_i32, %c0_i32_0 : i32, i32
  }
  func.func @transform_2(%arg0: i32) -> (i32, i32) {
    %c0_i32 = arith.constant 0 : i32
    %c0_i32_0 = arith.constant 0 : i32
    %c0_i32_1 = arith.constant 0 : i32
    return %c0_i32, %c0_i32_0 : i32, i32
  }
  func.func @transform_3(%arg0: i32) -> (i32, i32) {
    %c0_i32 = arith.constant 0 : i32
    %c0_i32_0 = arith.constant 0 : i32
    %c0_i32_1 = arith.constant 0 : i32
    return %c0_i32, %c0_i32_0 : i32, i32
  }
  func.func @transform_4(%arg0: i32) -> (i32, i32) {
    %c0_i32 = arith.constant 0 : i32
    %c0_i32_0 = arith.constant 0 : i32
    %c0_i32_1 = arith.constant 0 : i32
    return %c0_i32, %c0_i32_0 : i32, i32
  }
  func.func @transform_5(%arg0: i32) -> (i32, i32) {
    %c0_i32 = arith.constant 0 : i32
    %c0_i32_0 = arith.constant 0 : i32
    return %arg0, %c0_i32 : i32, i32
  }
}

</mosaic_0001>

<bundles_post_ra>
// kernel: tpu_custom_call.1
= control target key start
LH: loop header
LB: loop body
LE: loop exit
PB: predicated region body
PF: predicated region fallthrough
CT: control target
= control target key end

     0   :  { %10 = vsyncpa [#allocation3], 0  ;;  %s1480_s0 = inlined_call_operand.hbm [shape: f32[2,4,256], index: 0, kind: input, shape index: {}]   ;;  %s1481_s1 = inlined_call_operand.hbm [shape: f32[4,1024], index: 1, kind: input, shape index: {}]   ;;  %s1482_s2 = inlined_call_operand.hbm [shape: f32[1,1024], index: 2, kind: input, shape index: {}]   ;;  %s1483_s3 = inlined_call_operand.hbm [shape: f32[1024,128], index: 3, kind: input, shape index: {}]   ;;  %s1484_s4 = inlined_call_operand.vmem [shape: f32[1,128], index: 4, kind: input, shape index: {}]   ;;  %s1485_s5 = inlined_call_operand.hbm [shape: f32[2,128], index: 5, kind: output, shape index: {}]  }
   0x1   :  { %11 = vsyncpa [#allocation6], 0 }
   0x2   :  { %12 = vsyncpa [#allocation9], 0 }
   0x3   :  { %13 = vsyncpa [#allocation4], 0  ;;  %s1316_s18 = smov [#allocation5]   ;;  %s1317_s20 = smov [#allocation2]  }
   0x4   :  { %s32_s19 = sshll.u32 %s1316_s18, 4  ;;  %s19_s21 = sshll.u32 %s1317_s20, 4  ;;  %s33_s19 = int_to_ptr.vmem [resolvable:$true] %s32_s19  ;;  %s1354_s21 = int_to_ptr.vmem [resolvable:$true] %s19_s21 }
   0x5   :  { %s1198_s24 = scalar_lea.hbm %s1481_s1, 512 }
   0x6   :  { %p1199_p0 = scmp.ne.s32.totalorder %s1481_s1, %s1198_s24  ;;  %p1202_p1 = scmp.lt.u32.totalorder %s1198_s24, %s1481_s1 }
   0x8   :  { %p1204_p2 = pnand %p1202_p1, %p1199_p0 }
   0xa   :  { %1207 = shalt.err (!%p1204_p2)
}
   0xb   :  { %s1208_s29 = scalar_lea.vmem %s33_s19, 512  ;;  %p1213_p4 = scmp.lt.s32.totalorder %s33_s19, %s33_s19 }
   0xc   :  { %p1209_p3 = scmp.ne.s32.totalorder %s33_s19, %s1208_s29  ;;  %p1214_p5 = scmp.lt.s32.totalorder %s1208_s29, %s1208_s29 }
   0xe   :  { %p1215_p6 = por %p1214_p5, %p1213_p4 }
  0x10   :  { %p1216_p7 = pnand %p1215_p6, %p1209_p3 }
  0x12   :  { %1219 = shalt.err (!%p1216_p7)
}
  0x13   :  { %35 = dma.hbm_to_vmem [thread:$0]  %s1481_s1, 512, %s33_s19, [#allocation6]  }
  0x14   :  { %s1220_s9 = scalar_lea.hbm %s1480_s0, 256 }
  0x15   :  { %p1221_p8 = scmp.ne.s32.totalorder %s1480_s0, %s1220_s9  ;;  %p1224_p9 = scmp.lt.u32.totalorder %s1220_s9, %s1480_s0 }
  0x17   :  { %p1226_p10 = pnand %p1224_p9, %p1221_p8 }
  0x19   :  { %1229 = shalt.err (!%p1226_p10)
}
  0x1a   :  { %s1230_s14 = scalar_lea.vmem %s1354_s21, 256  ;;  %p1235_p12 = scmp.lt.s32.totalorder %s1354_s21, %s1354_s21 }
  0x1b   :  { %p1231_p11 = scmp.ne.s32.totalorder %s1354_s21, %s1230_s14  ;;  %p1236_p13 = scmp.lt.s32.totalorder %s1230_s14, %s1230_s14 }
  0x1d   :  { %p1237_p0 = por %p1236_p13, %p1235_p12 }
  0x1f   :  { %p1238_p1 = pnand %p1237_p0, %p1231_p11 }
  0x21   :  { %1241 = shalt.err (!%p1238_p1)
}
  0x22   :  { %s1318_s1 = smov 128   ;;  %s1319_s15 = smov 8  }
  0x23   :  { %25 = dma.hbm_to_vmem [thread:$0]  %s1480_s0, 256, %s1354_s21, [#allocation3], %s1318_s1, %s1318_s1, %s1319_s15  }
  0x24   :  { %s1320_s18 = smov [#allocation7]   ;;  %s1321_s20 = smov [#allocation8]  }
  0x25   :  { %s42_s19 = sshll.u32 %s1320_s18, 4  ;;  %s51_s22 = sshll.u32 %s1321_s20, 4  ;;  %s43_s19 = int_to_ptr.vmem [resolvable:$true] %s42_s19  ;;  %s1388_s22 = int_to_ptr.vmem [resolvable:$true] %s51_s22 }
  0x26   :  { %s1242_s25 = scalar_lea.hbm %s1482_s2, 128 }
  0x27   :  { %p1243_p2 = scmp.ne.s32.totalorder %s1482_s2, %s1242_s25  ;;  %p1246_p3 = scmp.lt.u32.totalorder %s1242_s25, %s1482_s2 }
  0x29   :  { %p1248_p4 = pnand %p1246_p3, %p1243_p2 }
  0x2b   :  { %1251 = shalt.err (!%p1248_p4)
}
  0x2c   :  { %s1252_s0 = scalar_lea.vmem %s43_s19, 128  ;;  %p1257_p6 = scmp.lt.s32.totalorder %s43_s19, %s43_s19 }
  0x2d   :  { %p1253_p5 = scmp.ne.s32.totalorder %s43_s19, %s1252_s0  ;;  %p1258_p7 = scmp.lt.s32.totalorder %s1252_s0, %s1252_s0 }
  0x2f   :  { %p1259_p8 = por %p1258_p7, %p1257_p6 }
  0x31   :  { %p1260_p9 = pnand %p1259_p8, %p1253_p5 }
  0x33   :  { %1263 = shalt.err (!%p1260_p9)
}
  0x34   :  { %45 = dma.hbm_to_vmem [thread:$0]  %s1482_s2, 128, %s43_s19, [#allocation6]  }
  0x35   :  { %s1264_s8 = scalar_lea.hbm %s1483_s3, 16384 }
  0x36   :  { %p1265_p10 = scmp.ne.s32.totalorder %s1483_s3, %s1264_s8  ;;  %p1268_p11 = scmp.lt.u32.totalorder %s1264_s8, %s1483_s3 }
  0x38   :  { %p1270_p12 = pnand %p1268_p11, %p1265_p10 }
  0x3a   :  { %1273 = shalt.err (!%p1270_p12)
}
  0x3b   :  { %s1274_s13 = scalar_lea.vmem %s1388_s22, 16384  ;;  %p1279_p0 = scmp.lt.s32.totalorder %s1388_s22, %s1388_s22 }
  0x3c   :  { %p1275_p13 = scmp.ne.s32.totalorder %s1388_s22, %s1274_s13  ;;  %p1280_p1 = scmp.lt.s32.totalorder %s1274_s13, %s1274_s13 }
  0x3e   :  { %p1281_p2 = por %p1280_p1, %p1279_p0 }
  0x40   :  { %p1282_p3 = pnand %p1281_p2, %p1275_p13 }
  0x42   :  { %1285 = shalt.err (!%p1282_p3)
}
  0x43   :  { %57 = dma.hbm_to_vmem [thread:$0]  %s1483_s3, 16384, %s1388_s22, [#allocation9], %s1318_s1, %s1318_s1, %s1319_s15  }
  0x44   :  { %1308 = dma.done.wait [#allocation3], 256  }
  0x45   :  { %1309 = vsyncadd [#allocation3], 4294967040 }
  0x46   :  { %1310 = dma.done.wait [#allocation6], 640  }
  0x47   :  { %1311 = vsyncadd [#allocation6], 4294966656 }
  0x48   :  { %1312 = dma.done.wait [#allocation9], 16384  }
  0x49   :  { %1313 = vsyncadd [#allocation9], 4294950912  ;;  %vm80_vm0 = vcmask 1043456   ;;  %v72_v0 = vld [vmem:[#allocation2] sm:$0xff]  ;;  %v73_v1 = vld [vmem:[#allocation2 + $0x8] sm:$0xff]  ;;  %v1322_v14 = vmov 0.0   ;;  %v97_v19 = vlaneseq }
  0x4a   :  { %v76_v2 = vcombine.high %v72_v0, %v72_v0  ;;  %v81_v3 = vsel %vm80_vm0, %v72_v0, 0.0  ;;  %v77_v4 = vcombine.high %v73_v1, %v73_v1  ;;  %v86_v6 = vsel %vm80_vm0, %v73_v1, 0.0  ;;  %v91_v10 = vld [vmem:[#allocation5] sm:$0xff]  ;;  %v92_v11 = vld [vmem:[#allocation5 + $0x8] sm:$0xff]  ;;  %242 = vmatprep.mubr.f32.mxu0 %v1322_v14  ;;  %v93_v15 = vld [vmem:[#allocation5 + $0x10] sm:$0xff]  ;;  %313 = vmatprep.mubr.f32.mxu1 %v1322_v14  ;;  %s1323_s15 = smov [#allocation10]  }
  0x4b   :  { %v155_v12 = vcombine.high %v91_v10, %v91_v10  ;;  %v156_v13 = vcombine.high %v92_v11, %v92_v11  ;;  %v94_v16 = vld [vmem:[#allocation5 + $0x18] sm:$0xff]  ;;  %v157_v17 = vcombine.high %v93_v15, %v93_v15  ;;  %v1432_v20 = vshrl.u32 %v97_v19, 7  ;;  %v486_v24 = vld [vmem:[#allocation8 + $0x80] sm:$0xff]  ;;  %v487_v26 = vld [vmem:[#allocation8 + $0x88] sm:$0xff]  ;;  %s892_s16 = sshll.u32 %s1323_s15, 4  ;;  %s893_s16 = int_to_ptr.vmem [resolvable:$true] %s892_s16 }
  0x4c   :  { %v82_v5 = vsel %vm80_vm0, %v76_v2, 0.0  ;;  %v87_v7 = vsel %vm80_vm0, %v77_v4, 0.0  ;;  %v158_v18 = vcombine.high %v94_v16, %v94_v16  ;;  %v140_v21 = vand.u32 127, %v97_v19  ;;  %v518_v27 = vld [vmem:[#allocation8 + $0x180] sm:$0xff]  ;;  %v519_v28 = vld [vmem:[#allocation8 + $0x188] sm:$0xff]  ;;  %v488_v35 = vld [vmem:[#allocation8 + $0x90] sm:$0xff]  ;;  %p1291_p5 = scmp.lt.s32.totalorder %s893_s16, %s893_s16 }
  0x4d   :  { %v83_v8 = vadd.f32 %v82_v5, %v81_v3  ;;  %v88_v9 = vadd.f32 %v87_v7, %v86_v6  ;;  %903 = vmatprep.subr.msk.mxu0 %vm80_vm0, %v155_v12  ;;  %906 = vmatprep.subr.msk.mxu1 %vm80_vm0, %v156_v13  ;;  %vm149_vm1 = vcmask 1041409   ;;  %vm159_vm2 = vcmask 31744   ;;  %v470_v31 = vld [vmem:[#allocation8] sm:$0xff]  ;;  %v471_v32 = vld [vmem:[#allocation8 + $0x8] sm:$0xff]  ;;  %v489_v39 = vld [vmem:[#allocation8 + $0x98] sm:$0xff]  ;;  %s1286_s17 = scalar_lea.vmem %s893_s16, 32 }
  0x4e   :  { %904 = vmatpush1.msk.msra.mxu0 %vm80_vm0, %v91_v10  ;;  %907 = vmatpush1.msk.msra.mxu1 %vm80_vm0, %v92_v11  ;;  %v143_v23 = vsub.s32 %v140_v21, %v1432_v20  ;;  %v502_v33 = vld [vmem:[#allocation8 + $0x100] sm:$0xff]  ;;  %v503_v34 = vld [vmem:[#allocation8 + $0x108] sm:$0xff]  ;;  %v1056_v37 = vpack.c.bf16 %v487_v26, %v486_v24  ;;  %v1088_v38 = vpack.c.bf16 %v519_v28, %v518_v27  ;;  %v520_v40 = vld [vmem:[#allocation8 + $0x190] sm:$0xff]  ;;  %p1287_p4 = scmp.ne.s32.totalorder %s893_s16, %s1286_s17  ;;  %p1292_p6 = scmp.lt.s32.totalorder %s1286_s17, %s1286_s17 }
  0x4f   :  { %84 = vadd.xlane.f32.xlu0 %v83_v8  ;;  %909 = vmatprep.subr.msk.mxu0 %vm80_vm0, %v157_v17  ;;  %v521_v41 = vld [vmem:[#allocation8 + $0x198] sm:$0xff]  ;;  %v1058_v42 = vpack.c.bf16 %v471_v32, %v470_v31  ;;  %v1090_v43 = vpack.c.bf16 %v503_v34, %v502_v33  ;;  %v472_v44 = vld [vmem:[#allocation8 + $0x10] sm:$0xff]  ;;  %v1060_v46 = vpack.c.bf16 %v489_v39, %v488_v35  ;;  %v490_v50 = vld [vmem:[#allocation8 + $0xa0] sm:$0xff] }
  0x50   :  { %912 = vmatprep.subr.msk.mxu1 %vm80_vm0, %v158_v18  ;;  %v473_v45 = vld [vmem:[#allocation8 + $0x18] sm:$0xff]  ;;  %v1092_v47 = vpack.c.bf16 %v521_v41, %v520_v40  ;;  %v504_v48 = vld [vmem:[#allocation8 + $0x110] sm:$0xff]  ;;  %v491_v51 = vld [vmem:[#allocation8 + $0xa8] sm:$0xff]  ;;  %p1293_p7 = por %p1292_p6, %p1291_p5 }
  0x51   :  { %v505_v49 = vld [vmem:[#allocation8 + $0x118] sm:$0xff]  ;;  %v522_v52 = vld [vmem:[#allocation8 + $0x1a0] sm:$0xff]  ;;  %v523_v53 = vld [vmem:[#allocation8 + $0x1a8] sm:$0xff]  ;;  %v1062_v54 = vpack.c.bf16 %v473_v45, %v472_v44  ;;  %v1064_v58 = vpack.c.bf16 %v491_v51, %v490_v50 }
  0x52   :  { %v1094_v55 = vpack.c.bf16 %v505_v49, %v504_v48  ;;  %v474_v56 = vld [vmem:[#allocation8 + $0x20] sm:$0xff]  ;;  %v475_v57 = vld [vmem:[#allocation8 + $0x28] sm:$0xff]  ;;  %v1096_v59 = vpack.c.bf16 %v523_v53, %v522_v52  ;;  %v492_v62 = vld [vmem:[#allocation8 + $0xb0] sm:$0xff]  ;;  %p1294_p8 = pnand %p1293_p7, %p1287_p4 }
  0x53   :  { %89 = vadd.xlane.f32.xlu0 %v88_v9  ;;  %v506_v60 = vld [vmem:[#allocation8 + $0x120] sm:$0xff]  ;;  %v507_v61 = vld [vmem:[#allocation8 + $0x128] sm:$0xff]  ;;  %v493_v63 = vld [vmem:[#allocation8 + $0xb8] sm:$0xff]  ;;  %v1066_v2 = vpack.c.bf16 %v475_v57, %v474_v56 }
  0x54   :  { %v524_v0 = vld [vmem:[#allocation8 + $0x1b0] sm:$0xff]  ;;  %v525_v1 = vld [vmem:[#allocation8 + $0x1b8] sm:$0xff]  ;;  %v1098_v3 = vpack.c.bf16 %v507_v61, %v506_v60  ;;  %v1068_v6 = vpack.c.bf16 %v493_v63, %v492_v62  ;;  %v494_v10 = vld [vmem:[#allocation8 + $0xc0] sm:$0xff] }
  0x55   :  { %v476_v4 = vld [vmem:[#allocation8 + $0x30] sm:$0xff]  ;;  %v477_v5 = vld [vmem:[#allocation8 + $0x38] sm:$0xff]  ;;  %v1100_v7 = vpack.c.bf16 %v525_v1, %v524_v0  ;;  %v495_v11 = vld [vmem:[#allocation8 + $0xc8] sm:$0xff] }
  0x56   :  { %v508_v8 = vld [vmem:[#allocation8 + $0x130] sm:$0xff]  ;;  %v509_v9 = vld [vmem:[#allocation8 + $0x138] sm:$0xff]  ;;  %v526_v12 = vld [vmem:[#allocation8 + $0x1c0] sm:$0xff]  ;;  %v1072_v18 = vpack.c.bf16 %v495_v11, %v494_v10 }
  0x57   :  { %v527_v13 = vld [vmem:[#allocation8 + $0x1c8] sm:$0xff]  ;;  %v510_v21 = vld [vmem:[#allocation8 + $0x140] sm:$0xff]  ;;  %v497_v24 = vld [vmem:[#allocation8 + $0xd8] sm:$0xff] }
  0x58   :  { %v479_v17 = vld [vmem:[#allocation8 + $0x48] sm:$0xff]  ;;  %v1104_v19 = vpack.c.bf16 %v527_v13, %v526_v12  ;;  %v529_v26 = vld [vmem:[#allocation8 + $0x1d8] sm:$0xff]  ;;  %v512_v33 = vld [vmem:[#allocation8 + $0x150] sm:$0xff]  ;;  %v119_v12 = vsub.s32 5, %v1432_v20  ;;  %v127_v13 = vsub.s32 7, %v1432_v20 }
  0x59   :  { %v513_v34 = vld [vmem:[#allocation8 + $0x158] sm:$0xff]  ;;  %v498_v35 = vld [vmem:[#allocation8 + $0xe0] sm:$0xff]  ;;  %v483_v44 = vld [vmem:[#allocation8 + $0x68] sm:$0xff] }
  0x5a   :  { %v1110_v40 = vpack.c.bf16 %v513_v34, %v512_v33  ;;  %v482_v41 = vld [vmem:[#allocation8 + $0x60] sm:$0xff]  ;;  %v500_v49 = vld [vmem:[#allocation8 + $0xf0] sm:$0xff]  ;;  %v501_v50 = vld [vmem:[#allocation8 + $0xf8] sm:$0xff] }
  0x5b   :  { %v514_v45 = vld [vmem:[#allocation8 + $0x160] sm:$0xff]  ;;  %v532_v51 = vld [vmem:[#allocation8 + $0x1f0] sm:$0xff]  ;;  %v1084_v52 = vpack.c.bf16 %v501_v50, %v500_v49  ;;  %v533_v53 = vld [vmem:[#allocation8 + $0x1f8] sm:$0xff] }
  0x5c   :  { %v1116_v56 = vpack.c.bf16 %v533_v53, %v532_v51  ;;  %v550_v61 = vld [vmem:[#allocation8 + $0x280] sm:$0xff]  ;;  %v551_v62 = vld [vmem:[#allocation8 + $0x288] sm:$0xff]  ;;  %v536_v33 = vld [vmem:[#allocation8 + $0x210] sm:$0xff] }
  0x5d   :  { %v582_v63 = vld [vmem:[#allocation8 + $0x380] sm:$0xff]  ;;  %v1120_v0 = vpack.c.bf16 %v551_v62, %v550_v61  ;;  %v583_v1 = vld [vmem:[#allocation8 + $0x388] sm:$0xff] }
  0x5e   :  { %v554_v49 = vld [vmem:[#allocation8 + $0x2a0] sm:$0xff] }
  0x5f   :  { %v586_v53 = vld [vmem:[#allocation8 + $0x3a0] sm:$0xff] }
  0xdc   :  { %v85_v22 = vpop.xlane.xlu0 %84 }
  0xdd   :  { %v144_v29 = vrot.slane %v85_v22, %v143_v23  ;;  %v511_v22 = vld [vmem:[#allocation8 + $0x148] sm:$0xff] }
  0xde   :  { %v1106_v28 = vpack.c.bf16 %v511_v22, %v510_v21 }
  0xe0   :  { %v90_v25 = vpop.xlane.xlu0 %89 }
  0xe1   :  { %v148_v30 = vrot.slane %v90_v25, %v143_v23  ;;  %v496_v23 = vld [vmem:[#allocation8 + $0xd0] sm:$0xff] }
  0xe2   :  { %v528_v25 = vld [vmem:[#allocation8 + $0x1d0] sm:$0xff]  ;;  %v1076_v31 = vpack.c.bf16 %v497_v24, %v496_v23  ;;  %v566_v23 = vld [vmem:[#allocation8 + $0x300] sm:$0xff]  ;;  %v567_v24 = vld [vmem:[#allocation8 + $0x308] sm:$0xff] }
  0xe3   :  { %v150_v36 = vsel %vm149_vm1, %v148_v30, %v144_v29  ;;  %v480_v29 = vld [vmem:[#allocation8 + $0x50] sm:$0xff]  ;;  %v481_v30 = vld [vmem:[#allocation8 + $0x58] sm:$0xff]  ;;  %v1108_v32 = vpack.c.bf16 %v529_v26, %v528_v25 }
  0xe4   :  { %905 = vmatmul.mubr.msk.f32.vlgmr.msra.gmra.mrb[0].mxu0 %vm159_vm2, %v150_v36  ;;  %908 = vmatmul.mubr.msk.f32.vlgmr.msra.gmra.mrb[0].mxu1 %vm159_vm2, %v150_v36  ;;  %v1078_v39 = vpack.c.bf16 %v481_v30, %v480_v29  ;;  %v552_v25 = vld [vmem:[#allocation8 + $0x290] sm:$0xff]  ;;  %v553_v30 = vld [vmem:[#allocation8 + $0x298] sm:$0xff] }
  0xe5   :  { %910 = vmatpush1.msk.msra.mxu0 %vm80_vm0, %v93_v15  ;;  %384 = vmatprep.mubr.f32.mxu0 %v1322_v14  ;;  %v1102_v15 = vpack.c.bf16 %v509_v9, %v508_v8 }
  0xe6   :  { %913 = vmatpush1.msk.msra.mxu1 %vm80_vm0, %v94_v16  ;;  %455 = vmatprep.mubr.f32.mxu1 %v1322_v14  ;;  %v1070_v14 = vpack.c.bf16 %v477_v5, %v476_v4  ;;  %v478_v16 = vld [vmem:[#allocation8 + $0x40] sm:$0xff]  ;;  %v107_v4 = vsub.s32 2, %v1432_v20  ;;  %v1443_v5 = vld [vmem:[#allocation7] sm:$0xff] }
  0xe7   :  { %1057 = vmatprep.subr.bf16.mxu0 %v1056_v37  ;;  %1089 = vmatprep.subr.bf16.mxu1 %v1088_v38  ;;  %v1074_v27 = vpack.c.bf16 %v479_v17, %v478_v16  ;;  %v530_v37 = vld [vmem:[#allocation8 + $0x1e0] sm:$0xff]  ;;  %v531_v38 = vld [vmem:[#allocation8 + $0x1e8] sm:$0xff]  ;;  %v128_v29 = vrot.slane %v1443_v5, %v127_v13  ;;  %v573_v13 = vld [vmem:[#allocation8 + $0x338] sm:$0xff] }
  0xe8   :  { %911 = vmatmul.mubr.msk.f32.vlgmr.msra.gmra.mrb[2].mxu0 %vm159_vm2, %v150_v36  ;;  %914 = vmatmul.mubr.msk.f32.vlgmr.msra.gmra.mrb[2].mxu1 %vm159_vm2, %v150_v36  ;;  %v499_v36 = vld [vmem:[#allocation8 + $0xe8] sm:$0xff]  ;;  %v108_v9 = vrot.slane %v1443_v5, %v107_v4  ;;  %v534_v16 = vld [vmem:[#allocation8 + $0x200] sm:$0xff]  ;;  %v589_v4 = vld [vmem:[#allocation8 + $0x3b8] sm:$0xff] }
  0xe9   :  { %1059 = vmatpush3.bf16.msra.mxu0 %v1058_v42  ;;  %1091 = vmatpush3.bf16.msra.mxu1 %v1090_v43  ;;  %v1080_v42 = vpack.c.bf16 %v499_v36, %v498_v35  ;;  %v1112_v43 = vpack.c.bf16 %v531_v38, %v530_v37  ;;  %v535_v17 = vld [vmem:[#allocation8 + $0x208] sm:$0xff] }
  0xea   :  { %1061 = vmatprep.subr.bf16.mxu0 %v1060_v46  ;;  %1093 = vmatprep.subr.bf16.mxu1 %v1092_v47  ;;  %v515_v46 = vld [vmem:[#allocation8 + $0x168] sm:$0xff]  ;;  %v1082_v47 = vpack.c.bf16 %v483_v44, %v482_v41  ;;  %v1122_v38 = vpack.c.bf16 %v535_v17, %v534_v16  ;;  %v568_v41 = vld [vmem:[#allocation8 + $0x310] sm:$0xff]  ;;  %v590_v16 = vld [vmem:[#allocation8 + $0x3c0] sm:$0xff] }
  0xeb   :  { %v1114_v48 = vpack.c.bf16 %v515_v46, %v514_v45  ;;  %v1124_v46 = vpack.c.bf16 %v553_v30, %v552_v25  ;;  %v591_v17 = vld [vmem:[#allocation8 + $0x3c8] sm:$0xff]  ;;  %v574_v25 = vld [vmem:[#allocation8 + $0x340] sm:$0xff]  ;;  %v593_v30 = vld [vmem:[#allocation8 + $0x3d8] sm:$0xff] }
  0xed   :  { %1063 = vmatpush3.bf16.msra.mxu0 %v1062_v54  ;;  %1095 = vmatpush3.bf16.msra.mxu1 %v1094_v55  ;;  %v484_v54 = vld [vmem:[#allocation8 + $0x70] sm:$0xff]  ;;  %v485_v55 = vld [vmem:[#allocation8 + $0x78] sm:$0xff] }
  0xee   :  { %1065 = vmatprep.subr.bf16.mxu0 %v1064_v58  ;;  %1097 = vmatprep.subr.bf16.mxu1 %v1096_v59  ;;  %v1086_v57 = vpack.c.bf16 %v485_v55, %v484_v54  ;;  %v516_v58 = vld [vmem:[#allocation8 + $0x170] sm:$0xff]  ;;  %v517_v59 = vld [vmem:[#allocation8 + $0x178] sm:$0xff]  ;;  %v587_v54 = vld [vmem:[#allocation8 + $0x3a8] sm:$0xff] }
  0xef   :  { %v1118_v60 = vpack.c.bf16 %v517_v59, %v516_v58  ;;  %v538_v59 = vld [vmem:[#allocation8 + $0x220] sm:$0xff]  ;;  %v1160_v62 = vpack.c.bf16 %v587_v54, %v586_v53  ;;  %v579_v54 = vld [vmem:[#allocation8 + $0x368] sm:$0xff] }
  0xf0   :  { %v578_v53 = vld [vmem:[#allocation8 + $0x360] sm:$0xff] }
  0xf1   :  { %1067 = vmatpush3.bf16.msra.mxu0 %v1066_v2  ;;  %1099 = vmatpush3.bf16.msra.mxu1 %v1098_v3  ;;  %v1152_v2 = vpack.c.bf16 %v583_v1, %v582_v63  ;;  %v99_v3 = vsub.s32 0, %v1432_v20  ;;  %v570_v63 = vld [vmem:[#allocation8 + $0x320] sm:$0xff]  ;;  %v556_v1 = vld [vmem:[#allocation8 + $0x2b0] sm:$0xff] }
  0xf2   :  { %1069 = vmatprep.subr.bf16.mxu0 %v1068_v6  ;;  %1101 = vmatprep.subr.bf16.mxu1 %v1100_v7  ;;  %v103_v6 = vsub.s32 1, %v1432_v20  ;;  %v111_v7 = vsub.s32 3, %v1432_v20 }
  0xf3   :  { %v100_v8 = vrot.slane %v1443_v5, %v99_v3  ;;  %v588_v3 = vld [vmem:[#allocation8 + $0x3b0] sm:$0xff] }
  0xf4   :  { %v104_v10 = vrot.slane %v1443_v5, %v103_v6  ;;  %v112_v11 = vrot.slane %v1443_v5, %v111_v7 }
  0xf5   :  { %1071 = vmatpush3.bf16.msra.mxu0 %v1070_v14  ;;  %1103 = vmatpush3.bf16.msra.mxu1 %v1102_v15 }
  0xf6   :  { %1073 = vmatprep.subr.bf16.mxu0 %v1072_v18  ;;  %1105 = vmatprep.subr.bf16.mxu1 %v1104_v19 }
  0xf9   :  { %1075 = vmatpush3.bf16.msra.mxu0 %v1074_v27  ;;  %1107 = vmatpush3.bf16.msra.mxu1 %v1106_v28  ;;  %v120_v28 = vrot.slane %v1443_v5, %v119_v12  ;;  %v572_v12 = vld [vmem:[#allocation8 + $0x330] sm:$0xff] }
  0xfa   :  { %1077 = vmatprep.subr.bf16.mxu0 %v1076_v31  ;;  %1109 = vmatprep.subr.bf16.mxu1 %v1108_v32  ;;  %v584_v31 = vld [vmem:[#allocation8 + $0x390] sm:$0xff]  ;;  %v585_v32 = vld [vmem:[#allocation8 + $0x398] sm:$0xff] }
  0xfd   :  { %1079 = vmatpush3.bf16.msra.mxu0 %v1078_v39  ;;  %1111 = vmatpush3.bf16.msra.mxu1 %v1110_v40  ;;  %v1154_v39 = vpack.c.bf16 %v567_v24, %v566_v23  ;;  %v537_v40 = vld [vmem:[#allocation8 + $0x218] sm:$0xff]  ;;  %v1168_v24 = vpack.c.bf16 %v591_v17, %v590_v16 }
  0xfe   :  { %1081 = vmatprep.subr.bf16.mxu0 %v1080_v42  ;;  %1113 = vmatprep.subr.bf16.mxu1 %v1112_v43 }
 0x101   :  { %1083 = vmatpush3.bf16.msra.mxu0 %v1082_v47  ;;  %1115 = vmatpush3.bf16.msra.mxu1 %v1114_v48  ;;  %v1156_v47 = vpack.c.bf16 %v585_v32, %v584_v31  ;;  %v569_v48 = vld [vmem:[#allocation8 + $0x318] sm:$0xff] }
 0x102   :  { %1085 = vmatprep.subr.bf16.mxu0 %v1084_v52  ;;  %1117 = vmatprep.subr.bf16.mxu1 %v1116_v56  ;;  %v555_v52 = vld [vmem:[#allocation8 + $0x2a8] sm:$0xff]  ;;  %v1158_v58 = vpack.c.bf16 %v569_v48, %v568_v41  ;;  %v562_v41 = vld [vmem:[#allocation8 + $0x2e0] sm:$0xff] }
 0x103   :  { %v1128_v61 = vpack.c.bf16 %v555_v52, %v554_v49  ;;  %v546_v48 = vld [vmem:[#allocation8 + $0x260] sm:$0xff]  ;;  %v547_v49 = vld [vmem:[#allocation8 + $0x268] sm:$0xff] }
 0x105   :  { %1087 = vmatpush3.bf16.msra.mxu0 %v1086_v57  ;;  %1119 = vmatpush3.bf16.msra.mxu1 %v1118_v60  ;;  %v1126_v57 = vpack.c.bf16 %v537_v40, %v536_v33  ;;  %v539_v60 = vld [vmem:[#allocation8 + $0x228] sm:$0xff]  ;;  %v544_v33 = vld [vmem:[#allocation8 + $0x250] sm:$0xff]  ;;  %v577_v40 = vld [vmem:[#allocation8 + $0x358] sm:$0xff] }
 0x106   :  { %1121 = vmatprep.subr.bf16.mxu0 %v1120_v0  ;;  %1153 = vmatprep.subr.bf16.mxu1 %v1152_v2  ;;  %v571_v0 = vld [vmem:[#allocation8 + $0x328] sm:$0xff]  ;;  %v557_v2 = vld [vmem:[#allocation8 + $0x2b8] sm:$0xff]  ;;  %v1130_v6 = vpack.c.bf16 %v539_v60, %v538_v59  ;;  %v1146_v60 = vpack.c.bf16 %v547_v49, %v546_v48 }
 0x107   :  { %v1162_v7 = vpack.c.bf16 %v571_v0, %v570_v63 }
 0x1b7   :  { %v244_v14 = vpop.f32.mrb[0].mxu0  ;;  %v315_v15 = vpop.f32.mrb[0].mxu1 }
 0x1b8   :  { %v245_v18 = vadd.f32 %v244_v14, %v100_v8  ;;  %v316_v19 = vadd.f32 %v315_v15, %v108_v9  ;;  %v246_v21 = vpop.f32.mrb[1].mxu0  ;;  %v317_v22 = vpop.f32.mrb[1].mxu1  ;;  %v540_v8 = vld [vmem:[#allocation8 + $0x230] sm:$0xff]  ;;  %v541_v9 = vld [vmem:[#allocation8 + $0x238] sm:$0xff]  ;;  %v558_v14 = vld [vmem:[#allocation8 + $0x2c0] sm:$0xff] }
 0x1b9   :  { %v247_v26 = vadd.f32 %v246_v21, %v104_v10  ;;  %v318_v27 = vadd.f32 %v317_v22, %v112_v11  ;;  %v1132_v10 = vpack.c.bf16 %v557_v2, %v556_v1  ;;  %v1164_v11 = vpack.c.bf16 %v589_v4, %v588_v3  ;;  %v559_v15 = vld [vmem:[#allocation8 + $0x2c8] sm:$0xff]  ;;  %v542_v21 = vld [vmem:[#allocation8 + $0x240] sm:$0xff]  ;;  %v549_v1 = vld [vmem:[#allocation8 + $0x278] sm:$0xff] }
 0x1ba   :  { %v462_v42 = vmax.f32 %v245_v18, 0.0  ;;  %v464_v43 = vmax.f32 %v316_v19, 0.0  ;;  %v1134_v18 = vpack.c.bf16 %v541_v9, %v540_v8  ;;  %v1166_v19 = vpack.c.bf16 %v573_v13, %v572_v12  ;;  %v543_v22 = vld [vmem:[#allocation8 + $0x248] sm:$0xff]  ;;  %v580_v2 = vld [vmem:[#allocation8 + $0x370] sm:$0xff]  ;;  %v581_v3 = vld [vmem:[#allocation8 + $0x378] sm:$0xff] }
 0x1bb   :  { %v463_v34 = vmax.f32 %v247_v26, 0.0  ;;  %v465_v35 = vmax.f32 %v318_v27, 0.0  ;;  %v1455_v36 = vpop.f32.mrb[2].mxu0  ;;  %v1457_v37 = vpop.f32.mrb[2].mxu1  ;;  %v1136_v23 = vpack.c.bf16 %v559_v15, %v558_v14  ;;  %v575_v26 = vld [vmem:[#allocation8 + $0x348] sm:$0xff]  ;;  %v560_v27 = vld [vmem:[#allocation8 + $0x2d0] sm:$0xff]  ;;  %v1138_v31 = vpack.c.bf16 %v543_v22, %v542_v21 }
 0x1bc   :  { %v388_v44 = vpop.f32.mrb[3].mxu0  ;;  %v459_v45 = vpop.f32.mrb[3].mxu1  ;;  %v1170_v32 = vpack.c.bf16 %v575_v26, %v574_v25  ;;  %v915_v12 = vld [vmem:[%s1484_s4] ss:$0 sm:$0xff] }
 0x1bd   :  { %v389_v50 = vadd.f32 %v388_v44, %v120_v28  ;;  %v460_v51 = vadd.f32 %v459_v45, %v128_v29  ;;  %669 = vmatprep.mubr.f32.mxu0 %v463_v34  ;;  %739 = vmatprep.mubr.f32.mxu1 %v465_v35  ;;  %v561_v28 = vld [vmem:[#allocation8 + $0x2d8] sm:$0xff]  ;;  %v592_v29 = vld [vmem:[#allocation8 + $0x3d0] sm:$0xff]  ;;  %v595_v44 = vld [vmem:[#allocation8 + $0x3e8] sm:$0xff]  ;;  %v115_v45 = vsub.s32 4, %v1432_v20 }
 0x1be   :  { %670 = vmatmul.mubr.f32.vlgmr.msra.gmra.mrb[4].mxu0 %v462_v42  ;;  %740 = vmatmul.mubr.f32.vlgmr.msra.gmra.mrb[4].mxu1 %v464_v43  ;;  %v545_v34 = vld [vmem:[#allocation8 + $0x258] sm:$0xff]  ;;  %v1140_v35 = vpack.c.bf16 %v561_v28, %v560_v27  ;;  %v563_v42 = vld [vmem:[#allocation8 + $0x2e8] sm:$0xff]  ;;  %v594_v43 = vld [vmem:[#allocation8 + $0x3e0] sm:$0xff] }
 0x1bf   :  { %v467_v55 = vmax.f32 %v389_v50, 0.0  ;;  %v469_v56 = vmax.f32 %v460_v51, 0.0  ;;  %1123 = vmatpush3.bf16.msra.mxu0 %v1122_v38  ;;  %1155 = vmatpush3.bf16.msra.mxu1 %v1154_v39  ;;  %v1172_v38 = vpack.c.bf16 %v593_v30, %v592_v29  ;;  %v576_v39 = vld [vmem:[#allocation8 + $0x350] sm:$0xff]  ;;  %v123_v50 = vsub.s32 6, %v1432_v20 }
 0x1c0   :  { %1125 = vmatprep.subr.bf16.mxu0 %v1124_v46  ;;  %1157 = vmatprep.subr.bf16.mxu1 %v1156_v47  ;;  %v1142_v46 = vpack.c.bf16 %v545_v34, %v544_v33  ;;  %v1174_v47 = vpack.c.bf16 %v577_v40, %v576_v39  ;;  %v1144_v51 = vpack.c.bf16 %v563_v42, %v562_v41 }
 0x1c1   :  { %809 = vmatprep.mubr.f32.mxu0 %v467_v55  ;;  %879 = vmatprep.mubr.f32.mxu1 %v469_v56  ;;  %v1176_v52 = vpack.c.bf16 %v595_v44, %v594_v43  ;;  %v564_v55 = vld [vmem:[#allocation8 + $0x2f0] sm:$0xff]  ;;  %v565_v56 = vld [vmem:[#allocation8 + $0x2f8] sm:$0xff]  ;;  %v116_v59 = vrot.slane %v1443_v5, %v115_v45  ;;  %v124_v63 = vrot.slane %v1443_v5, %v123_v50 }
 0x1c2   :  { %v1148_v20 = vpack.c.bf16 %v565_v56, %v564_v55 }
 0x1c3   :  { %1127 = vmatpush3.bf16.msra.mxu0 %v1126_v57  ;;  %1159 = vmatpush3.bf16.msra.mxu1 %v1158_v58  ;;  %v596_v57 = vld [vmem:[#allocation8 + $0x3f0] sm:$0xff]  ;;  %v597_v58 = vld [vmem:[#allocation8 + $0x3f8] sm:$0xff]  ;;  %v458_v8 = vadd.f32 %v1457_v37, %v124_v63 }
 0x1c4   :  { %1129 = vmatprep.subr.bf16.mxu0 %v1128_v61  ;;  %1161 = vmatprep.subr.bf16.mxu1 %v1160_v62  ;;  %v1178_v61 = vpack.c.bf16 %v579_v54, %v578_v53  ;;  %v548_v62 = vld [vmem:[#allocation8 + $0x270] sm:$0xff]  ;;  %v1180_v0 = vpack.c.bf16 %v597_v58, %v596_v57 }
 0x1c5   :  { %v1150_v4 = vpack.c.bf16 %v549_v1, %v548_v62  ;;  %v468_v9 = vmax.f32 %v458_v8, 0.0 }
 0x1c7   :  { %1131 = vmatpush3.bf16.msra.mxu0 %v1130_v6  ;;  %1163 = vmatpush3.bf16.msra.mxu1 %v1162_v7  ;;  %v1182_v6 = vpack.c.bf16 %v581_v3, %v580_v2  ;;  %v387_v7 = vadd.f32 %v1455_v36, %v116_v59 }
 0x1c8   :  { %1133 = vmatprep.subr.bf16.mxu0 %v1132_v10  ;;  %1165 = vmatprep.subr.bf16.mxu1 %v1164_v11 }
 0x1c9   :  { %v466_v5 = vmax.f32 %v387_v7, 0.0 }
 0x1cb   :  { %1135 = vmatpush3.bf16.msra.mxu0 %v1134_v18  ;;  %1167 = vmatpush3.bf16.msra.mxu1 %v1166_v19 }
 0x1cc   :  { %1137 = vmatprep.subr.bf16.mxu0 %v1136_v23  ;;  %1169 = vmatprep.subr.bf16.mxu1 %v1168_v24 }
 0x1cf   :  { %1139 = vmatpush3.bf16.msra.mxu0 %v1138_v31  ;;  %1171 = vmatpush3.bf16.msra.mxu1 %v1170_v32 }
 0x1d0   :  { %1141 = vmatprep.subr.bf16.mxu0 %v1140_v35  ;;  %1173 = vmatprep.subr.bf16.mxu1 %v1172_v38 }
 0x1d3   :  { %1143 = vmatpush3.bf16.msra.mxu0 %v1142_v46  ;;  %1175 = vmatpush3.bf16.msra.mxu1 %v1174_v47 }
 0x1d4   :  { %1145 = vmatprep.subr.bf16.mxu0 %v1144_v51  ;;  %1177 = vmatprep.subr.bf16.mxu1 %v1176_v52 }
 0x1d7   :  { %1147 = vmatpush3.bf16.msra.mxu0 %v1146_v60  ;;  %1179 = vmatpush3.bf16.msra.mxu1 %v1178_v61 }
 0x1d8   :  { %1149 = vmatprep.subr.bf16.mxu0 %v1148_v20  ;;  %1181 = vmatprep.subr.bf16.mxu1 %v1180_v0 }
 0x1db   :  { %1151 = vmatpush3.bf16.msra.mxu0 %v1150_v4  ;;  %1183 = vmatpush3.bf16.msra.mxu1 %v1182_v6 }
 0x1de   :  { %810 = vmatmul.mubr.f32.vlgmr.msra.gmra.mrb[6].mxu0 %v466_v5  ;;  %880 = vmatmul.mubr.f32.vlgmr.msra.gmra.mrb[6].mxu1 %v468_v9 }
 0x291   :  { %v948_v10 = vpop.f32.mrb[4].mxu0  ;;  %v983_v11 = vpop.f32.mrb[4].mxu1 }
 0x292   :  { %v949_v13 = vpop.f32.mrb[5].mxu0  ;;  %v984_v14 = vpop.f32.mrb[5].mxu1 }
 0x293   :  { %v950_v15 = vadd.f32 %v949_v13, %v948_v10  ;;  %v985_v36 = vadd.f32 %v984_v14, %v983_v11 }
 0x295   :  { %v672_v16 = vadd.f32 %v950_v15, %v915_v12 }
 0x297   :  { %v742_v37 = vadd.f32 %v985_v36, %v672_v16 }
 0x2b1   :  { %v1018_v17 = vpop.f32.mrb[6].mxu0  ;;  %v1053_v18 = vpop.f32.mrb[6].mxu1 }
 0x2b2   :  { %v1019_v19 = vpop.f32.mrb[7].mxu0  ;;  %v1054_v21 = vpop.f32.mrb[7].mxu1 }
 0x2b3   :  { %v1020_v22 = vadd.f32 %v1019_v19, %v1018_v17  ;;  %v1055_v23 = vadd.f32 %v1054_v21, %v1053_v18 }
 0x2b5   :  { %v812_v24 = vadd.f32 %v1020_v22, %v742_v37 }
 0x2b7   :  { %v882_v25 = vadd.f32 %v1055_v23, %v812_v24 }
 0x2b9   :  { %885 = vst [vmem:[#allocation10] sm:$0x3] %v882_v25 }
 0x2ba   :  { %1297 = shalt.err (!%p1294_p8)
}
 0x2bb   :  { %s1298_s19 = scalar_lea.hbm %s1485_s5, 32 }
 0x2bc   :  { %p1299_p9 = scmp.ne.s32.totalorder %s1485_s5, %s1298_s19  ;;  %p1302_p10 = scmp.lt.u32.totalorder %s1298_s19, %s1485_s5 }
 0x2be   :  { %p1304_p11 = pnand %p1302_p10, %p1299_p9 }
 0x2c0   :  { %1307 = shalt.err (!%p1304_p11)
}
 0x2c1   :  { %895 = dma.vmem_to_hbm [thread:$0]  %s893_s16, 32, %s1485_s5, [#allocation4]  }
 0x2c2   :  { %1314 = dma.done.wait [#allocation4], 32  }
 0x2c3   :  { %1315 = vsyncadd [#allocation4], 4294967264 }
 0x2c4   :  { %899 = vsyncpa [#allocation3], 1 }
 0x2c5   :  { %900 = vsyncpa [#allocation6], 1 }
 0x2c6   :  { %901 = vsyncpa [#allocation9], 1 }
 0x2c7   :  { %902 = vsyncpa [#allocation4], 1 }

</bundles_post_ra>
